<compile_context>
chip_gen: v5e
topology: v5e:2x2
jax: 0.10.0
libtpu: 0.0.40
codegen_flags: <defaults>
</compile_context>

<pallas_src>
import functools

import jax
import jax.numpy as jnp
from jax import lax
from jax.experimental import pallas as pl
from jax.experimental.pallas import tpu as pltpu


LANE = 128


def _round_up(v, m):
    return ((v + m - 1) // m) * m


def _div_tile(n, cap):
    """Largest multiple of 128 that divides n (n is a multiple of 128) and is <= cap."""
    t = min(n, (cap // LANE) * LANE)
    while n % t != 0:
        t -= LANE
    return t


def gcn_kernel(adj_ref, y_ref, dinv_ref, b_ref, out_ref, *, tm, tk):
    """One (batch, row-tile, k-tile) step of  out = dinv * ((A + I) @ y) + bias."""
    i = pl.program_id(1)
    k = pl.program_id(2)
    nk = pl.num_programs(2)

    # int8 adjacency tile widened to bf16 (values are exact 0/1) -> native MXU matmul.
    adj = adj_ref[0].astype(jnp.bfloat16)                          # (tm, tk)
    koff = pl.multiple_of(k * tk, 128)
    y_blk = y_ref[0, pl.ds(koff, tk), :]                           # (tk, Cp) bf16, resident
    part = jnp.dot(adj, y_blk, preferred_element_type=jnp.float32)  # (tm, Cp) f32

    @pl.when(k == 0)
    def _():
        out_ref[0] = part                                          # first K tile: overwrite

    @pl.when(k != 0)
    def _():
        out_ref[0] += part                                         # later K tiles: accumulate

    @pl.when(k == nk - 1)
    def _():
        ioff = pl.multiple_of(i * tm, 128)
        y_row = y_ref[0, pl.ds(ioff, tm), :].astype(jnp.float32)   # identity fold: + I @ y
        out_ref[0] = dinv_ref[0] * (out_ref[0] + y_row) + b_ref[...]


@functools.partial(jax.jit, static_argnames=("tm_cap", "tk_cap"))
def graph_conv_layer(x, edge_index, weight, bias, *, tm_cap=512, tk_cap=2048):
    """x: (B, N, Cin) f32, edge_index: (2, E, B) int32,
    weight: (Cout, Cin), bias: (Cout,).  Returns (B, N, Cout)."""
    B, N, Cin = x.shape
    Cout = weight.shape[0]
    E = edge_index.shape[1]

    Np = _round_up(N, LANE)          # pad to 128, independent of tile size
    Cp = _round_up(Cout, LANE)       # lane-dense output width
    tm = _div_tile(Np, tm_cap)
    tk = _div_tile(Np, tk_cap)

    # ---- wrapper-side glue (plain XLA) --------------------------------------
    # Block-diagonal adjacency, built once, directly in its final padded int8 layout.
    b_idx = jnp.broadcast_to(jnp.arange(B, dtype=edge_index.dtype)[None, :],
                             (E, B)).reshape(-1)
    src = edge_index[0].reshape(-1)
    dst = edge_index[1].reshape(-1)
    adj = jnp.zeros((B, Np, Np), jnp.int8).at[b_idx, src, dst].set(1)  # dedupes duplicates

    deg = jnp.sum(adj, axis=2, dtype=jnp.float32) + 1.0           # rowsum(A + I), (B, Np)
    dinv = jnp.where(deg > 0, lax.rsqrt(deg), 0.0)                # deg >= 1, guard is for parity

    # Fold Linear into the propagation:  y = (dinv * x) @ W^T   (bf16 for the MXU).
    y = jnp.einsum("bnc,oc->bno", x * dinv[:, :N, None], weight)  # (B, N, Cout) f32
    y_p = jnp.zeros((B, Np, Cp), jnp.bfloat16).at[:, :N, :Cout].set(y.astype(jnp.bfloat16))
    dinv_p = dinv[:, :, None]                                     # (B, Np, 1) f32
    b_p = jnp.zeros((1, Cp), jnp.float32).at[0, :Cout].set(bias)

    grid = (B, Np // tm, Np // tk)                                # batch, row tiles, K tiles

    cost = pl.CostEstimate(
        flops=2 * B * Np * Np * Cp,
        transcendentals=0,
        bytes_accessed=adj.size + y_p.size * 2 + B * Np * Cp * 4 + dinv_p.size * 4,
    )

    out = pl.pallas_call(
        functools.partial(gcn_kernel, tm=tm, tk=tk),
        out_shape=jax.ShapeDtypeStruct((B, Np, Cp), jnp.float32),
        grid_spec=pltpu.PrefetchScalarGridSpec(
            num_scalar_prefetch=0,
            grid=grid,
            in_specs=[
                pl.BlockSpec((1, tm, tk), lambda b, i, k: (b, i, k)),  # int8 adjacency tile
                pl.BlockSpec((1, Np, Cp), lambda b, i, k: (b, 0, 0)),  # y: VMEM-resident/sample
                pl.BlockSpec((1, tm, 1),  lambda b, i, k: (b, i, 0)),  # dinv row block
                pl.BlockSpec((1, Cp),     lambda b, i, k: (0, 0)),     # bias
            ],
            out_specs=pl.BlockSpec((1, tm, Cp), lambda b, i, k: (b, i, 0)),
        ),
        compiler_params=pltpu.CompilerParams(
            dimension_semantics=("parallel", "parallel", "arbitrary")),
        cost_estimate=cost,
    )(adj, y_p, dinv_p, b_p)

    return out[:, :N, :Cout].astype(x.dtype)


def _reference(x, edge_index, weight, bias):
    # Pure-JAX reference mirroring the PyTorch forward exactly (dense BN x BN).
    B, N, Cin = x.shape
    BN = B * N
    offsets = (jnp.arange(B, dtype=edge_index.dtype) * N)[None, :]       # (1, B)
    src = (edge_index[0] + offsets).reshape(-1)
    dst = (edge_index[1] + offsets).reshape(-1)
    adj = jnp.zeros((BN, BN), jnp.float32).at[src, dst].set(1.0)
    adj = adj + jnp.eye(BN, dtype=jnp.float32)
    D = adj.sum(axis=1)
    d = jnp.power(D, -0.5)
    d = jnp.where(jnp.isinf(d), 0.0, d)
    adj_n = d[:, None] * adj * d[None, :]
    h = adj_n @ x.reshape(BN, Cin)
    out = h @ weight.T + bias
    return out.reshape(B, N, -1)


if __name__ == "__main__":
    key = jax.random.PRNGKey(0)
    B, N, Cin, Cout, E = 2, 128, 8, 16, 24

    k_x, k_e, k_w, k_b = jax.random.split(key, 4)
    x = jax.random.normal(k_x, (B, N, Cin), dtype=jnp.float32)
    edge_index = jax.random.randint(k_e, (2, E, B), 0, N, dtype=jnp.int32)

    # PyTorch-style Linear(in_channels, out_channels) init.
    bound = 1.0 / (Cin ** 0.5)
    weight = jax.random.uniform(k_w, (Cout, Cin), jnp.float32, -bound, bound)
    bias = jax.random.uniform(k_b, (Cout,), jnp.float32, -bound, bound)

    out = jax.block_until_ready(graph_conv_layer(x, edge_index, weight, bias))
    ref = _reference(x, edge_index, weight, bias)
    assert out.shape == (B, N, Cout), out.shape
    err = float(jnp.abs(out - ref).max())
    # y is rounded to bf16 for the native-MXU path; accumulation stays f32.
    assert jnp.allclose(out, ref, atol=2e-2, rtol=2e-2), err

    # Second configuration with tiles capped small -> grid (2, 2, 2); exercises the
    # k-accumulation branch and multiple row/batch tiles.
    B2, N2, E2 = 2, 512, 64
    k_x2, k_e2 = jax.random.split(k_x, 2)
    x2 = jax.random.normal(k_x2, (B2, N2, Cin), dtype=jnp.float32)
    edge_index2 = jax.random.randint(k_e2, (2, E2, B2), 0, N2, dtype=jnp.int32)
    out2 = jax.block_until_ready(
        graph_conv_layer(x2, edge_index2, weight, bias, tm_cap=256, tk_cap=256))
    ref2 = _reference(x2, edge_index2, weight, bias)
    err2 = float(jnp.abs(out2 - ref2).max())
    assert jnp.allclose(out2, ref2, atol=2e-2, rtol=2e-2), err2

    print("KERNEL_OK")
</pallas_src>

<mosaic_0001>
module attributes {stable_mosaic.version = 11 : i64} {
  func.func @gcn_kernel(%arg0: i32, %arg1: i32, %arg2: i32, %arg3: memref<1x128x128xi8, #tpu.memory_space<vmem>>, %arg4: memref<1x128x128xbf16, #tpu.memory_space<vmem>>, %arg5: memref<1x128x1xf32, #tpu.memory_space<vmem>>, %arg6: memref<1x128xf32, #tpu.memory_space<vmem>>, %arg7: memref<1x128x128xf32, #tpu.memory_space<vmem>>) attributes {dimension_semantics = [#tpu.dimension_semantics<parallel>, #tpu.dimension_semantics<parallel>, #tpu.dimension_semantics<arbitrary>], iteration_bounds = array<i64: 2, 1, 1>, scalar_prefetch = 0 : i64, scratch_operands = 0 : i64, tpu.core_type = #tpu.core_type<tc>, window_params = [{transform_indices = @transform_0, window_bounds = array<i64: 1, 128, 128>}, {transform_indices = @transform_1, window_bounds = array<i64: 1, 128, 128>}, {transform_indices = @transform_2, window_bounds = array<i64: 1, 128, 1>}, {pipeline_mode = #tpu.pipeline_mode<synchronous>, transform_indices = @transform_3, window_bounds = array<i64: 1, 128>}, {transform_indices = @transform_4, window_bounds = array<i64: 1, 128, 128>}]} {
    %c0 = arith.constant 0 : index
    %c0_0 = arith.constant 0 : index
    %c0_1 = arith.constant 0 : index
    %0 = vector.load %arg3[%c0, %c0_0, %c0_1] : memref<1x128x128xi8, #tpu.memory_space<vmem>>, vector<1x128x128xi8>
    %1 = vector.shape_cast %0 : vector<1x128x128xi8> to vector<128x128xi8>
    %2 = arith.sitofp %1 : vector<128x128xi8> to vector<128x128xbf16>
    %c128_i32 = arith.constant 128 : i32
    %3 = arith.muli %arg2, %c128_i32 : i32
    %4 = tpu.assume_multiple %3, 128 : i32
    %c0_2 = arith.constant 0 : index
    %5 = arith.index_cast %4 : i32 to index
    %c0_3 = arith.constant 0 : index
    %6 = vector.load %arg4[%c0_2, %5, %c0_3] : memref<1x128x128xbf16, #tpu.memory_space<vmem>>, vector<1x128x128xbf16>
    %7 = vector.shape_cast %6 : vector<1x128x128xbf16> to vector<128x128xbf16>
    %cst = arith.constant dense<0.000000e+00> : vector<128x128xf32>
    %8 = tpu.matmul %2, %7, %cst {dimension_numbers = #tpu.dot_dimension_numbers<[1], [0], [0], [1], [0, 0, 1, 1], [], []>} : vector<128x128xbf16>, vector<128x128xbf16>, vector<128x128xf32> -> vector<128x128xf32>
    %c0_i32 = arith.constant 0 : i32
    %9 = arith.cmpi eq, %arg2, %c0_i32 : i32
    %10 = arith.extui %9 : i1 to i32
    %c0_i32_4 = arith.constant 0 : i32
    %11 = arith.cmpi ne, %10, %c0_i32_4 : i32
    scf.if %11 {
      %c0_9 = arith.constant 0 : index
      %c0_10 = arith.constant 0 : index
      %c0_11 = arith.constant 0 : index
      %18 = vector.load %arg7[%c0_9, %c0_10, %c0_11] : memref<1x128x128xf32, #tpu.memory_space<vmem>>, vector<1x128x128xf32>
      %19 = vector.shape_cast %18 : vector<1x128x128xf32> to vector<128x128xf32>
      %20 = vector.shape_cast %8 : vector<128x128xf32> to vector<1x128x128xf32>
      tpu.vector_store %arg7[%c0_9, %c0_10, %c0_11], %20 {strides = array<i32>} : memref<1x128x128xf32, #tpu.memory_space<vmem>>, vector<1x128x128xf32>,
    } else {
    }
    %c0_i32_5 = arith.constant 0 : i32
    %12 = arith.cmpi ne, %arg2, %c0_i32_5 : i32
    %13 = arith.extui %12 : i1 to i32
    %c0_i32_6 = arith.constant 0 : i32
    %14 = arith.cmpi ne, %13, %c0_i32_6 : i32
    scf.if %14 {
      %c0_9 = arith.constant 0 : index
      %c0_10 = arith.constant 0 : index
      %c0_11 = arith.constant 0 : index
      %18 = vector.load %arg7[%c0_9, %c0_10, %c0_11] : memref<1x128x128xf32, #tpu.memory_space<vmem>>, vector<1x128x128xf32>
      %19 = vector.shape_cast %18 : vector<1x128x128xf32> to vector<128x128xf32>
      %20 = arith.addf %19, %8 : vector<128x128xf32>
      %c0_12 = arith.constant 0 : index
      %c0_13 = arith.constant 0 : index
      %c0_14 = arith.constant 0 : index
      %21 = vector.load %arg7[%c0_12, %c0_13, %c0_14] : memref<1x128x128xf32, #tpu.memory_space<vmem>>, vector<1x128x128xf32>
      %22 = vector.shape_cast %21 : vector<1x128x128xf32> to vector<128x128xf32>
      %23 = vector.shape_cast %20 : vector<128x128xf32> to vector<1x128x128xf32>
      tpu.vector_store %arg7[%c0_12, %c0_13, %c0_14], %23 {strides = array<i32>} : memref<1x128x128xf32, #tpu.memory_space<vmem>>, vector<1x128x128xf32>,
    } else {
    }
    %c0_i32_7 = arith.constant 0 : i32
    %15 = arith.cmpi eq, %arg2, %c0_i32_7 : i32
    %16 = arith.extui %15 : i1 to i32
    %c0_i32_8 = arith.constant 0 : i32
    %17 = arith.cmpi ne, %16, %c0_i32_8 : i32
    scf.if %17 {
      %c128_i32_9 = arith.constant 128 : i32
      %18 = arith.muli %arg1, %c128_i32_9 : i32
      %19 = tpu.assume_multiple %18, 128 : i32
      %c0_10 = arith.constant 0 : index
      %20 = arith.index_cast %19 : i32 to index
      %c0_11 = arith.constant 0 : index
      %21 = vector.load %arg4[%c0_10, %20, %c0_11] : memref<1x128x128xbf16, #tpu.memory_space<vmem>>, vector<1x128x128xbf16>
      %22 = vector.shape_cast %21 : vector<1x128x128xbf16> to vector<128x128xbf16>
      %23 = arith.extf %22 : vector<128x128xbf16> to vector<128x128xf32>
      %c0_12 = arith.constant 0 : index
      %c0_13 = arith.constant 0 : index
      %c0_14 = arith.constant 0 : index
      %24 = vector.load %arg5[%c0_12, %c0_13, %c0_14] : memref<1x128x1xf32, #tpu.memory_space<vmem>>, vector<1x128x1xf32>
      %25 = vector.shape_cast %24 : vector<1x128x1xf32> to vector<128x1xf32>
      %c0_15 = arith.constant 0 : index
      %c0_16 = arith.constant 0 : index
      %c0_17 = arith.constant 0 : index
      %26 = vector.load %arg7[%c0_15, %c0_16, %c0_17] : memref<1x128x128xf32, #tpu.memory_space<vmem>>, vector<1x128x128xf32>
      %27 = vector.shape_cast %26 : vector<1x128x128xf32> to vector<128x128xf32>
      %28 = arith.addf %27, %23 : vector<128x128xf32>
      %29 = vector.broadcast %25 : vector<128x1xf32> to vector<128x128xf32>
      %30 = arith.mulf %29, %28 : vector<128x128xf32>
      %c0_18 = arith.constant 0 : index
      %c0_19 = arith.constant 0 : index
      %31 = vector.load %arg6[%c0_18, %c0_19] : memref<1x128xf32, #tpu.memory_space<vmem>>, vector<1x128xf32>
      %32 = vector.broadcast %31 : vector<1x128xf32> to vector<128x128xf32>
      %33 = arith.addf %30, %32 : vector<128x128xf32>
      %c0_20 = arith.constant 0 : index
      %c0_21 = arith.constant 0 : index
      %c0_22 = arith.constant 0 : index
      %34 = vector.load %arg7[%c0_20, %c0_21, %c0_22] : memref<1x128x128xf32, #tpu.memory_space<vmem>>, vector<1x128x128xf32>
      %35 = vector.shape_cast %34 : vector<1x128x128xf32> to vector<128x128xf32>
      %36 = vector.shape_cast %33 : vector<128x128xf32> to vector<1x128x128xf32>
      tpu.vector_store %arg7[%c0_20, %c0_21, %c0_22], %36 {strides = array<i32>} : memref<1x128x128xf32, #tpu.memory_space<vmem>>, vector<1x128x128xf32>,
    } else {
    }
    return
  }
  func.func @transform_0(%arg0: i32, %arg1: i32, %arg2: i32) -> (i32, i32, i32) {
    %c0_i32 = arith.constant 0 : i32
    return %arg0, %arg1, %arg2 : i32, i32, i32
  }
  func.func @transform_1(%arg0: i32, %arg1: i32, %arg2: i32) -> (i32, i32, i32) {
    %c0_i32 = arith.constant 0 : i32
    %c0_i32_0 = arith.constant 0 : i32
    %c0_i32_1 = arith.constant 0 : i32
    return %arg0, %c0_i32, %c0_i32_0 : i32, i32, i32
  }
  func.func @transform_2(%arg0: i32, %arg1: i32, %arg2: i32) -> (i32, i32, i32) {
    %c0_i32 = arith.constant 0 : i32
    %c0_i32_0 = arith.constant 0 : i32
    return %arg0, %arg1, %c0_i32 : i32, i32, i32
  }
  func.func @transform_3(%arg0: i32, %arg1: i32, %arg2: i32) -> (i32, i32) {
    %c0_i32 = arith.constant 0 : i32
    %c0_i32_0 = arith.constant 0 : i32
    %c0_i32_1 = arith.constant 0 : i32
    return %c0_i32, %c0_i32_0 : i32, i32
  }
  func.func @transform_4(%arg0: i32, %arg1: i32, %arg2: i32) -> (i32, i32, i32) {
    %c0_i32 = arith.constant 0 : i32
    %c0_i32_0 = arith.constant 0 : i32
    return %arg0, %arg1, %c0_i32 : i32, i32, i32
  }
}

</mosaic_0001>

<bundles_post_ra>
// kernel: graph_conv_layer.1
= control target key start
LH: loop header
LB: loop body
LE: loop exit
PB: predicated region body
PF: predicated region fallthrough
CT: control target
= control target key end

     0   :  { %s1144_s15 = smov 0   ;;  %s1146_s16 = smov 0   ;;  %s1306_s0 = inlined_call_operand.vmem [shape: s8[2,128,128], index: 0, kind: input, shape index: {}]   ;;  %s1307_s1 = inlined_call_operand.vmem [shape: bf16[2,128,128], index: 1, kind: input, shape index: {}]   ;;  %s1308_s2 = inlined_call_operand.vmem [shape: f32[2,128,1], index: 2, kind: input, shape index: {}]   ;;  %s1309_s3 = inlined_call_operand.vmem [shape: f32[1,128], index: 3, kind: input, shape index: {}]   ;;  %s1310_s4 = inlined_call_operand.vmem [shape: f32[2,128,128], index: 4, kind: output, shape index: {}]  }
   0x1   :  { %s1148_s17 = smov 0  }
   0x2 LB: > { %s33_s18 = sadd.s32 1, %s1112_s16  ;;  %p908_p0 = scmp.ge.s32.totalorder %s1116_s17, 1  ;;  %s1116_s17 = sphi %s1148_s17, %s14_s17   ;;  %s1112_s16 = sphi %s1146_s16, %s1312_s16   ;;  %s1108_s15 = sphi %s1144_s15, %s1311_s15  }
   0x3   : > { %p35_p1 = scmp.ge.s32.totalorder %s33_s18, 2  ;;  %p222_p2 = scmp.lt.s32.totalorder %s1116_s17, 3 }
   0x5   : > { %s1314_s18 = smov (%p35_p1, %s33_s18), 0  ;;  %p223_p3 = pnand %p908_p0, %p222_p2 }
   0x6   : > { %p274_p4 = scmp.lt.s32.totalorder (!%p223_p3), %s1108_s15, 1 }
   0x7   : > { %226 = sbr.rel (%p223_p3) target bundleno = 212 (0xd4), region = 36 }
   0xc   : > { %v1118_v0 = vmov 0   ;;  %s1316_s15 = smov (!%p274_p4, %s1108_s15), 1 }
   0xd   : > { %1090 = vset.pattern.permute.xlu0 %v1118_v0  ;;  %1091 = vset.pattern.permute.xlu1 %v1118_v0  ;;  %s952_s19 = sshll.u32 %s1316_s15, 6  ;;  %s953_s20 = sshll.u32 %s1316_s15, 7 }
   0xe   : > { %1092 = vset.pattern.permute.xlu2 %v1118_v0  ;;  %s1169_s23 = scalar_lea.vmem %s1307_s1, %s952_s19  ;;  %s1176_s26 = scalar_lea.vmem %s1308_s2, %s953_s20 }
   0xf   : > { %v962_v1 = vld [vmem:[%s1169_s23 + $0x38] sm:$0xff]  ;;  %v597_v2 = vld [vmem:[%s1176_s26] sm:$0xff]  ;;  %v961_v3 = vld [vmem:[%s1169_s23 + $0x30] sm:$0xff]  ;;  %s951_s27 = sshll.u32 %s1316_s15, 5  ;;  %s1252_s9 = scalar_lea.vmem %s1310_s4, %s953_s20 }
  0x10   : > { %647 = vperm.xlu0 %1090, %v597_v2   ;;  %436 = vmatpush.bf16.msra.mxu0 %v962_v1  ;;  %v599_v4 = vld [vmem:[%s1176_s26 + $0x10] sm:$0xff]  ;;  %v960_v5 = vld [vmem:[%s1169_s23 + $0x28] sm:$0xff]  ;;  %v601_v7 = vld [vmem:[%s1176_s26 + $0x20] sm:$0xff]  ;;  %s284_s30 = scalar_lea.vmem %s1306_s0, %s951_s27 }
  0x11   : > { %1034 = vmatpush.bf16.msra.mxu1 %v962_v1  ;;  %1035 = vmatpush.bf16.msra.mxu2 %v962_v1  ;;  %v598_v6 = vld [vmem:[%s1176_s26 + $0x8] sm:$0xff]  ;;  %v600_v8 = vld [vmem:[%s1176_s26 + $0x18] sm:$0xff]  ;;  %v959_v9 = vld [vmem:[%s1169_s23 + $0x20] sm:$0xff] }
  0x12   : > { %1036 = vmatpush.bf16.msra.mxu3 %v962_v1  ;;  %657 = vperm.xlu1 %1091, %v599_v4   ;;  %v602_v10 = vld [vmem:[%s1176_s26 + $0x28] sm:$0xff]  ;;  %v958_v11 = vld [vmem:[%s1169_s23 + $0x18] sm:$0xff]  ;;  %v603_v12 = vld [vmem:[%s1176_s26 + $0x30] sm:$0xff] }
  0x13   : > { %667 = vperm.xlu2 %1092, %v601_v7   ;;  %v604_v13 = vld [vmem:[%s1176_s26 + $0x38] sm:$0xff]  ;;  %v957_v14 = vld [vmem:[%s1169_s23 + $0x10] sm:$0xff]  ;;  %v1196_v15 = vld [vmem:[%s284_s30] sm:$0xff]  }
  0x14   : > { %437 = vmatpush.bf16.msra.mxu0 %v961_v3  ;;  %v1198_v16 = vld [vmem:[%s284_s30 + $0x8] sm:$0xff]   ;;  %v1200_v17 = vld [vmem:[%s284_s30 + $0x10] sm:$0xff]   ;;  %v1202_v18 = vld [vmem:[%s284_s30 + $0x18] sm:$0xff]   ;;  %v1004_v19 = vunpack.c.0.s8 %v1196_v15  ;;  %v1005_v20 = vunpack.c.1.s8 %v1196_v15  ;;  %v1008_v47 = vunpack.c.2.s8 %v1196_v15  ;;  %v1009_v48 = vunpack.c.3.s8 %v1196_v15 }
  0x15   : > { %1037 = vmatpush.bf16.msra.mxu1 %v961_v3  ;;  %1038 = vmatpush.bf16.msra.mxu2 %v961_v3  ;;  %v1012_v21 = vunpack.c.0.s8 %v1198_v16  ;;  %v1013_v22 = vunpack.c.1.s8 %v1198_v16  ;;  %v605_v23 = vld [vmem:[%s1176_s26 + $0x40] sm:$0xff]  ;;  %v956_v24 = vld [vmem:[%s1169_s23 + $0x8] sm:$0xff]  ;;  %v1020_v26 = vunpack.c.0.s8 %v1200_v17  ;;  %v1021_v27 = vunpack.c.1.s8 %v1200_v17  ;;  %v607_v34 = vld [vmem:[%s1176_s26 + $0x50] sm:$0xff] }
  0x16   : > { %1039 = vmatpush.bf16.msra.mxu3 %v961_v3  ;;  %v606_v25 = vld [vmem:[%s1176_s26 + $0x48] sm:$0xff]  ;;  %v1028_v28 = vunpack.c.0.s8 %v1202_v18  ;;  %v1029_v29 = vunpack.c.1.s8 %v1202_v18  ;;  %v343_v30 = vcvt.s32.f32 %v1004_v19  ;;  %v344_v31 = vcvt.s32.f32 %v1005_v20  ;;  %v955_v35 = vld [vmem:[%s1169_s23] sm:$0xff]  ;;  %v608_v42 = vld [vmem:[%s1176_s26 + $0x58] sm:$0xff] }
  0x17   : > { %v347_v32 = vcvt.s32.f32 %v1012_v21  ;;  %v348_v33 = vcvt.s32.f32 %v1013_v22  ;;  %v351_v36 = vcvt.s32.f32 %v1020_v26  ;;  %v352_v37 = vcvt.s32.f32 %v1021_v27  ;;  %v609_v45 = vld [vmem:[%s1176_s26 + $0x60] sm:$0xff]  ;;  %v610_v46 = vld [vmem:[%s1176_s26 + $0x68] sm:$0xff]  ;;  %v611_v51 = vld [vmem:[%s1176_s26 + $0x70] sm:$0xff] }
  0x18   : > { %652 = vperm.xlu0 %1090, %v598_v6   ;;  %438 = vmatpush.bf16.msra.mxu0 %v960_v5  ;;  %v355_v38 = vcvt.s32.f32 %v1028_v28  ;;  %v356_v39 = vcvt.s32.f32 %v1029_v29  ;;  %v359_v40 = vpack.c.bf16 %v344_v31, %v343_v30  ;;  %v1016_v49 = vunpack.c.2.s8 %v1198_v16  ;;  %v612_v56 = vld [vmem:[%s1176_s26 + $0x78] sm:$0xff]  ;;  %v1243_v21 = vld [vmem:[%s1309_s3] ss:$0 sm:$0xff] }
  0x19   : > { %1040 = vmatpush.bf16.msra.mxu1 %v960_v5  ;;  %1041 = vmatpush.bf16.msra.mxu2 %v960_v5  ;;  %v361_v41 = vpack.c.bf16 %v348_v33, %v347_v32  ;;  %v363_v43 = vpack.c.bf16 %v352_v37, %v351_v36  ;;  %v1017_v50 = vunpack.c.3.s8 %v1198_v16  ;;  %v1024_v52 = vunpack.c.2.s8 %v1200_v17 }
  0x1a   : > { %1042 = vmatpush.bf16.msra.mxu3 %v960_v5  ;;  %662 = vperm.xlu1 %1091, %v600_v8   ;;  %v365_v44 = vpack.c.bf16 %v356_v39, %v355_v38  ;;  %v1025_v53 = vunpack.c.3.s8 %v1200_v17  ;;  %v1032_v54 = vunpack.c.2.s8 %v1202_v18  ;;  %v1033_v55 = vunpack.c.3.s8 %v1202_v18 }
  0x1b   : > { %672 = vperm.xlu2 %1092, %v602_v10   ;;  %v345_v57 = vcvt.s32.f32 %v1008_v47  ;;  %v346_v58 = vcvt.s32.f32 %v1009_v48  ;;  %v349_v59 = vcvt.s32.f32 %v1016_v49  ;;  %v350_v60 = vcvt.s32.f32 %v1017_v50  ;;  %v997_v47 = vld [vmem:[%s1169_s23 + $0x18] sm:$0xff]  }
  0x1c   : > { %439 = vmatpush.bf16.msra.mxu0 %v959_v9  ;;  %v353_v61 = vcvt.s32.f32 %v1024_v52  ;;  %v354_v62 = vcvt.s32.f32 %v1025_v53  ;;  %v357_v63 = vcvt.s32.f32 %v1032_v54  ;;  %v358_v0 = vcvt.s32.f32 %v1033_v55 }
  0x1d   : > { %1043 = vmatpush.bf16.msra.mxu1 %v959_v9  ;;  %1044 = vmatpush.bf16.msra.mxu2 %v959_v9  ;;  %v360_v1 = vpack.c.bf16 %v346_v58, %v345_v57  ;;  %v362_v2 = vpack.c.bf16 %v350_v60, %v349_v59  ;;  %v977_v57 = vunpack.c.l.bf16 %v997_v47 }
  0x1e   : > { %1045 = vmatpush.bf16.msra.mxu3 %v959_v9  ;;  %v364_v3 = vpack.c.bf16 %v354_v62, %v353_v61  ;;  %v366_v4 = vpack.c.bf16 %v358_v0, %v357_v63 }
  0x20   : > { %677 = vperm.xlu0 %1090, %v603_v12   ;;  %440 = vmatpush.bf16.msra.mxu0 %v958_v11  ;;  %v964_v12 = vld [vmem:[%s1169_s23] sm:$0xff]  }
  0x21   : > { %1046 = vmatpush.bf16.msra.mxu1 %v958_v11  ;;  %1047 = vmatpush.bf16.msra.mxu2 %v958_v11  ;;  %v965_v15 = vunpack.c.l.bf16 %v964_v12  ;;  %v966_v32 = vunpack.c.h.bf16 %v964_v12 }
  0x22   : > { %1048 = vmatpush.bf16.msra.mxu3 %v958_v11  ;;  %682 = vperm.xlu1 %1091, %v604_v13   ;;  %v996_v13 = vld [vmem:[%s1169_s23 + $0x10] sm:$0xff]  }
  0x23   : > { %687 = vperm.xlu2 %1092, %v605_v23   ;;  %v973_v16 = vunpack.c.l.bf16 %v996_v13  ;;  %v998_v23 = vld [vmem:[%s1169_s23 + $0x20] sm:$0xff]   ;;  %v974_v33 = vunpack.c.h.bf16 %v996_v13 }
  0x24   : > { %441 = vmatpush.bf16.msra.mxu0 %v957_v14  ;;  %v981_v28 = vunpack.c.l.bf16 %v998_v23  ;;  %v982_v52 = vunpack.c.h.bf16 %v998_v23  ;;  %v978_v23 = vunpack.c.h.bf16 %v997_v47 }
  0x25   : > { %1049 = vmatpush.bf16.msra.mxu1 %v957_v14  ;;  %1050 = vmatpush.bf16.msra.mxu2 %v957_v14 }
  0x26   : > { %1051 = vmatpush.bf16.msra.mxu3 %v957_v14 }
  0x28   : > { %692 = vperm.xlu0 %1090, %v606_v25   ;;  %442 = vmatpush.bf16.msra.mxu0 %v956_v24 }
  0x29   : > { %1052 = vmatpush.bf16.msra.mxu1 %v956_v24  ;;  %1053 = vmatpush.bf16.msra.mxu2 %v956_v24 }
  0x2a   : > { %1054 = vmatpush.bf16.msra.mxu3 %v956_v24  ;;  %697 = vperm.xlu1 %1091, %v607_v34   ;;  %v1000_v24 = vld [vmem:[%s1169_s23 + $0x30] sm:$0xff]  }
  0x2b   : > { %702 = vperm.xlu2 %1092, %v608_v42   ;;  %v989_v29 = vunpack.c.l.bf16 %v1000_v24  ;;  %v990_v53 = vunpack.c.h.bf16 %v1000_v24 }
  0x2c   : > { %443 = vmatpush.bf16.msra.mxu0 %v955_v35 }
  0x2d   : > { %1055 = vmatpush.bf16.msra.mxu1 %v955_v35  ;;  %1056 = vmatpush.bf16.msra.mxu2 %v955_v35 }
  0x2e   : > { %1057 = vmatpush.bf16.msra.mxu3 %v955_v35 }
  0x2f   : > { %444 = vmatmul.bf16.vlgmr.msra.gmra.mxu0 %v359_v40 }
  0x30   : > { %454 = vmatmul.bf16.vlgmr.msra.gmra.mxu1 %v361_v41  ;;  %464 = vmatmul.bf16.vlgmr.msra.gmra.mxu2 %v363_v43 }
  0x31   : > { %474 = vmatmul.bf16.vlgmr.msra.gmra.mxu3 %v365_v44  ;;  %707 = vperm.xlu0 %1090, %v609_v45  }
  0x32   : > { %712 = vperm.xlu1 %1091, %v610_v46   ;;  %v995_v46 = vld [vmem:[%s1169_s23 + $0x8] sm:$0xff]  }
  0x33   : > { %717 = vperm.xlu2 %1092, %v611_v51  }
  0x39   : > { %722 = vperm.xlu0 %1090, %v612_v56   ;;  %v969_v56 = vunpack.c.l.bf16 %v995_v46 }
  0x3f   : > { %449 = vmatmul.bf16.gmra.mxu0 %v360_v1 }
  0x40   : > { %459 = vmatmul.bf16.gmra.mxu1 %v362_v2  ;;  %469 = vmatmul.bf16.gmra.mxu2 %v364_v3 }
  0x41   : > { %479 = vmatmul.bf16.gmra.mxu3 %v366_v4  ;;  %v999_v4 = vld [vmem:[%s1169_s23 + $0x28] sm:$0xff]  }
  0x6d   : > { %v668_v8 = vpop.permute.xlu2 %667 }
  0x75   : > { %v673_v11 = vpop.permute.xlu2 %672 }
  0x7d   : > { %v688_v27 = vpop.permute.xlu2 %687 }
  0x82   : > { %v648_v5 = vpop.permute.xlu0 %647 }
  0x84   : > { %v1230_v6 = vpop.permute.xlu1 %657 }
  0x85   : > { %v703_v58 = vpop.permute.xlu2 %702 }
  0x8a   : > { %v653_v7 = vpop.permute.xlu0 %652 }
  0x8c   : > { %v1232_v9 = vpop.permute.xlu1 %662 }
  0x92   : > { %v1234_v10 = vpop.permute.xlu0 %677 }
  0x94   : > { %v1238_v14 = vpop.permute.xlu1 %682 }
  0x9a   : > { %v693_v17 = vpop.permute.xlu0 %692 }
  0x9c   : > { %v1256_v34 = vpop.permute.xlu1 %697 }
  0xa3   : > { %v708_v41 = vpop.permute.xlu0 %707 }
  0xa4   : > { %v713_v1 = vpop.permute.xlu1 %712 }
  0xac   : > { %v445_v18 = vpop.f32.mrf.mxu0 }
  0xad   : > { %v455_v19 = vpop.f32.mrf.mxu1  ;;  %v629_v20 = vadd.f32 %v965_v15, %v445_v18 }
  0xae   : > { %v633_v22 = vadd.f32 %v973_v16, %v455_v19  ;;  %v985_v16 = vunpack.c.l.bf16 %v999_v4 }
  0xaf   : > { %v725_v25 = vmul.f32 %v648_v5, %v629_v20  ;;  %v1001_v5 = vld [vmem:[%s1169_s23 + $0x38] sm:$0xff]  }
  0xb0   : > { %v729_v26 = vmul.f32 %v668_v8, %v633_v22  ;;  %v993_v18 = vunpack.c.l.bf16 %v1001_v5  ;;  %v970_v22 = vunpack.c.h.bf16 %v995_v46 }
  0xb1   : > { %v745_v30 = vadd.f32 %v1243_v21, %v725_v25 }
  0xb2   : > { %v749_v31 = vadd.f32 %v1243_v21, %v729_v26 }
  0xb3   : > { %761 = vst [vmem:[%s1252_s9] sm:$0xff] %v745_v30  ;;  %v465_v35 = vpop.f32.mrf.mxu2 }
  0xb4   : > { %v475_v36 = vpop.f32.mrf.mxu3  ;;  %765 = vst [vmem:[%s1252_s9 + $0x20] sm:$0xff] %v749_v31  ;;  %v637_v37 = vadd.f32 %v981_v28, %v465_v35  ;;  %v447_v39 = vpop.f32.mrf.mxu0 }
  0xb5   : > { %v641_v38 = vadd.f32 %v989_v29, %v475_v36  ;;  %v457_v40 = vpop.f32.mrf.mxu1  ;;  %v630_v42 = vadd.f32 %v966_v32, %v447_v39 }
  0xb6   : > { %v634_v43 = vadd.f32 %v974_v33, %v457_v40  ;;  %v733_v44 = vmul.f32 %v688_v27, %v637_v37  ;;  %v718_v27 = vpop.permute.xlu2 %717  ;;  %v986_v37 = vunpack.c.h.bf16 %v999_v4 }
  0xb7   : > { %v737_v45 = vmul.f32 %v708_v41, %v641_v38  ;;  %v726_v48 = vmul.f32 %v653_v7, %v630_v42  ;;  %v994_v38 = vunpack.c.h.bf16 %v1001_v5 }
  0xb8   : > { %v730_v49 = vmul.f32 %v673_v11, %v634_v43  ;;  %v753_v50 = vadd.f32 %v1243_v21, %v733_v44 }
  0xb9   : > { %v757_v51 = vadd.f32 %v1243_v21, %v737_v45  ;;  %v746_v54 = vadd.f32 %v1243_v21, %v726_v48 }
  0xba   : > { %v750_v55 = vadd.f32 %v1243_v21, %v730_v49  ;;  %769 = vst [vmem:[%s1252_s9 + $0x40] sm:$0xff] %v753_v50 }
  0xbb   : > { %773 = vst [vmem:[%s1252_s9 + $0x60] sm:$0xff] %v757_v51  ;;  %v467_v59 = vpop.f32.mrf.mxu2 }
  0xbc   : > { %v477_v60 = vpop.f32.mrf.mxu3  ;;  %762 = vst [vmem:[%s1252_s9 + $0x8] sm:$0xff] %v746_v54  ;;  %v638_v61 = vadd.f32 %v982_v52, %v467_v59  ;;  %v450_v63 = vpop.f32.mrf.mxu0 }
  0xbd   : > { %v642_v62 = vadd.f32 %v990_v53, %v477_v60  ;;  %v460_v0 = vpop.f32.mrf.mxu1  ;;  %766 = vst [vmem:[%s1252_s9 + $0x28] sm:$0xff] %v750_v55  ;;  %v631_v2 = vadd.f32 %v969_v56, %v450_v63 }
  0xbe   : > { %v635_v3 = vadd.f32 %v977_v57, %v460_v0  ;;  %v734_v7 = vmul.f32 %v693_v17, %v638_v61 }
  0xbf   : > { %v738_v8 = vmul.f32 %v713_v1, %v642_v62  ;;  %v727_v11 = vmul.f32 %v1230_v6, %v631_v2 }
  0xc0   : > { %v731_v12 = vmul.f32 %v1234_v10, %v635_v3  ;;  %v754_v13 = vadd.f32 %v1243_v21, %v734_v7 }
  0xc1   : > { %v758_v15 = vadd.f32 %v1243_v21, %v738_v8  ;;  %v747_v19 = vadd.f32 %v1243_v21, %v727_v11 }
  0xc2   : > { %v751_v20 = vadd.f32 %v1243_v21, %v731_v12  ;;  %770 = vst [vmem:[%s1252_s9 + $0x48] sm:$0xff] %v754_v13 }
  0xc3   : > { %774 = vst [vmem:[%s1252_s9 + $0x68] sm:$0xff] %v758_v15  ;;  %v470_v17 = vpop.f32.mrf.mxu2 }
  0xc4   : > { %v480_v24 = vpop.f32.mrf.mxu3  ;;  %763 = vst [vmem:[%s1252_s9 + $0x10] sm:$0xff] %v747_v19  ;;  %v639_v6 = vadd.f32 %v985_v16, %v470_v17  ;;  %v452_v25 = vpop.f32.mrf.mxu0 }
  0xc5   : > { %v643_v10 = vadd.f32 %v993_v18, %v480_v24  ;;  %v462_v26 = vpop.f32.mrf.mxu1  ;;  %767 = vst [vmem:[%s1252_s9 + $0x30] sm:$0xff] %v751_v20  ;;  %v632_v28 = vadd.f32 %v970_v22, %v452_v25 }
  0xc6   : > { %v636_v29 = vadd.f32 %v978_v23, %v462_v26  ;;  %v735_v30 = vmul.f32 %v1256_v34, %v639_v6 }
  0xc7   : > { %v739_v31 = vmul.f32 %v718_v27, %v643_v10  ;;  %v728_v32 = vmul.f32 %v1232_v9, %v632_v28 }
  0xc8   : > { %v732_v33 = vmul.f32 %v1238_v14, %v636_v29  ;;  %v755_v35 = vadd.f32 %v1243_v21, %v735_v30  ;;  %v723_v14 = vpop.permute.xlu0 %722 }
  0xc9   : > { %v759_v36 = vadd.f32 %v1243_v21, %v739_v31  ;;  %v748_v39 = vadd.f32 %v1243_v21, %v728_v32 }
  0xca   : > { %v752_v40 = vadd.f32 %v1243_v21, %v732_v33  ;;  %771 = vst [vmem:[%s1252_s9 + $0x50] sm:$0xff] %v755_v35 }
  0xcb   : > { %775 = vst [vmem:[%s1252_s9 + $0x70] sm:$0xff] %v759_v36  ;;  %v472_v34 = vpop.f32.mrf.mxu2 }
  0xcc   : > { %v482_v41 = vpop.f32.mrf.mxu3  ;;  %764 = vst [vmem:[%s1252_s9 + $0x18] sm:$0xff] %v748_v39  ;;  %v640_v9 = vadd.f32 %v986_v37, %v472_v34 }
  0xcd   : > { %v644_v42 = vadd.f32 %v994_v38, %v482_v41  ;;  %768 = vst [vmem:[%s1252_s9 + $0x38] sm:$0xff] %v752_v40 }
  0xce   : > { %v736_v43 = vmul.f32 %v703_v58, %v640_v9 }
  0xcf   : > { %v740_v44 = vmul.f32 %v723_v14, %v644_v42 }
  0xd0   : > { %v756_v45 = vadd.f32 %v1243_v21, %v736_v43 }
  0xd1   : > { %v760_v46 = vadd.f32 %v1243_v21, %v740_v44 }
  0xd2   : > { %772 = vst [vmem:[%s1252_s9 + $0x58] sm:$0xff] %v756_v45 }
  0xd3   : > { %776 = vst [vmem:[%s1252_s9 + $0x78] sm:$0xff] %v760_v46 }
  0xd4 PF: > { %s14_s17 = sadd.s32 1, %s1116_s17   ;;  %s1311_s15 = smov %s1112_s16 }
  0xd5   : > { %p11_p5 = scmp.ge.s32.totalorder %s14_s17, 4   ;;  %s1312_s16 = smov %s1314_s18 }
  0xd7   :  { %13 = sbr.rel (!%p11_p5) target bundleno = 2 (0x2), region = 86 }

</bundles_post_ra>
